<compile_context>
chip_gen: v5e
topology: v5e:2x2
jax: 0.10.0
libtpu: 0.0.40
codegen_flags: <defaults>
</compile_context>

<pallas_src>
import math

import jax
import jax.numpy as jnp
import numpy as np
from jax.experimental import pallas as pl
from jax.experimental.pallas import tpu as pltpu

# ----------------------- small synthetic config -----------------------
B = 2            # batch
S = 8            # sequence length (prefill, past_key_value=None)
H = 32           # hidden_size
NH = 4           # num_attention_heads
NKV = 2          # num_key_value_heads (GQA)
HD = H // NH     # head_dim = 8
I = 64           # intermediate_size
EPS = 1e-6
ROPE_THETA = 10000.0

T = B * S        # tokens after folding batch into sublanes
G = NH // NKV    # GQA groups


# ----------------------- the fused decoder-layer kernel -----------------------
def decoder_layer_kernel(x_ref, g1_ref, g2_ref, cos_ref, sin_ref, bias_ref,
                         kvmask_ref, seg_ref,
                         wq_ref, wqr_ref, wk_ref, wkr_ref, wv_ref,
                         wo_ref, wg_ref, wu_ref, wd_ref, o_ref):
    f32, bf16 = jnp.float32, jnp.bfloat16
    x = x_ref[...]                                          # (T, H) f32

    # ---- input RMSNorm (f32) ----
    var = jnp.mean(x * x, axis=-1, keepdims=True)
    h1 = (x * jax.lax.rsqrt(var + EPS) * g1_ref[...]).astype(bf16)

    dot = lambda a, w_ref: jnp.dot(a, w_ref[...], preferred_element_type=f32)

    # ---- Q/K/V projections (bf16 MXU). rotate_half / scale / GQA-expansion are
    #      folded into the weights, so RoPE is a single full-matrix FMA. ----
    q = dot(h1, wq_ref)                                     # (T, NH*HD) pre-scaled
    qr = dot(h1, wqr_ref)                                   # rotate_half(q), pre-scaled
    k = dot(h1, wk_ref)                                     # (T, NH*HD) GQA-expanded
    kr = dot(h1, wkr_ref)                                   # rotate_half(k)
    v = dot(h1, wv_ref)                                     # (T, NH*HD) GQA-expanded

    cos = cos_ref[...]
    sin = sin_ref[...]
    q = (q * cos + qr * sin).astype(bf16)                   # RoPE (scale folded in)
    k = k * cos + kr * sin

    # ---- all-head causal attention via block-diagonal packing ----
    kvmask = kvmask_ref[...]                                # (NH*T, NH*HD) 0/1
    kbig = (jnp.tile(k, (NH, 1)) * kvmask).astype(bf16)     # (NH*T, NH*HD)
    vbig = (jnp.tile(v, (NH, 1)) * kvmask).astype(bf16)

    # scores[t, h*T + s] = <q_h[t], k_h[s]>   (one MXU call for every head)
    s = jax.lax.dot_general(q, kbig, (((1,), (1,)), ((), ())),
                            preferred_element_type=f32)     # (T, NH*T)
    s = s + bias_ref[...]                                   # causal + same-batch mask
    m = jnp.max(s, axis=-1, keepdims=True)                  # row max (exact for per-head softmax)
    p = jnp.exp(s - m)                                      # masked entries -> 0
    den = jnp.dot(p, seg_ref[...], preferred_element_type=f32)   # per-head sums, pre-broadcast
    p = (p * pl.reciprocal(den, approx=True)).astype(bf16)
    attn = jnp.dot(p, vbig, preferred_element_type=f32)     # (T, H), heads interleaved

    # ---- o_proj + residual (LinearAdd fusion) ----
    x2 = dot(attn.astype(bf16), wo_ref) + x

    # ---- post-attention RMSNorm ----
    var2 = jnp.mean(x2 * x2, axis=-1, keepdims=True)
    h2 = (x2 * jax.lax.rsqrt(var2 + EPS) * g2_ref[...]).astype(bf16)

    # ---- SwiGLU MLP (Linear2SiluMul) + down_proj + residual (LinearAdd) ----
    gate = dot(h2, wg_ref)
    up = dot(h2, wu_ref)
    act = (gate * jax.lax.logistic(gate) * up).astype(bf16)
    o_ref[...] = dot(act, wd_ref) + x2


# ----------------------- wrapper (weight folding + pallas_call) -----------------------
def _rotate_half_cols(w, n_heads):
    """W' such that x @ W' == rotate_half(x @ W), applied per head block."""
    w3 = w.reshape(w.shape[0], n_heads, HD)
    lo, hi = w3[..., :HD // 2], w3[..., HD // 2:]
    return jnp.concatenate([-hi, lo], axis=-1).reshape(w.shape[0], n_heads * HD)


def _expand_kv_cols(w):
    """GQA: repeat each kv head's weight block so the kernel sees NH full heads."""
    w3 = w.reshape(w.shape[0], NKV, HD)
    return jnp.repeat(w3, G, axis=1).reshape(w.shape[0], NH * HD)


def llama_decoder_layer(hidden_states, params):
    g1, g2, wq, wk, wv, wo, wg, wu, wd = params
    scale = 1.0 / math.sqrt(HD)

    # fold RoPE rotate_half, attention scale and GQA expansion into the (bf16) weights
    wk_e = _expand_kv_cols(wk)
    wv_e = _expand_kv_cols(wv)
    bf = lambda w: w.astype(jnp.bfloat16)
    wq_s, wqr_s = bf(wq * scale), bf(_rotate_half_cols(wq, NH) * scale)
    wk_b, wkr_b = bf(wk_e), bf(_rotate_half_cols(wk_e, NH))
    wv_b, wo_b = bf(wv_e), bf(wo)
    wg_b, wu_b, wd_b = bf(wg), bf(wu), bf(wd)

    # RoPE tables, tiled over heads; positions restart per batch (batch folded into rows)
    inv_freq = 1.0 / (ROPE_THETA ** (np.arange(0, HD, 2, dtype=np.float32) / HD))
    pos = (np.arange(T) % S).astype(np.float32)
    freqs = np.outer(pos, inv_freq)
    emb = np.concatenate([freqs, freqs], axis=-1)                       # (T, HD)
    cos_t = jnp.asarray(np.tile(np.cos(emb), (1, NH)), jnp.float32)     # (T, NH*HD)
    sin_t = jnp.asarray(np.tile(np.sin(emb), (1, NH)), jnp.float32)

    # causal + same-batch mask as an additive bias, tiled over the packed score columns
    bid = np.arange(T) // S
    pid = np.arange(T) % S
    allowed = (bid[:, None] == bid[None, :]) & (pid[None, :] <= pid[:, None])
    bias = np.where(allowed, 0.0, -1e30).astype(np.float32)             # (T, T)
    bias_t = jnp.asarray(np.tile(bias, (1, NH)), jnp.float32)           # (T, NH*T)

    # block-diagonal head masks for the packed attention matmuls
    chunk = np.arange(NH * T) // T                                      # score column -> head
    col_head = np.arange(NH * HD) // HD                                 # feature column -> head
    kvmask = jnp.asarray((chunk[:, None] == col_head[None, :]).astype(np.float32))  # (NH*T, NH*HD)
    seg = jnp.asarray((chunk[:, None] == chunk[None, :]).astype(np.float32))        # (NH*T, NH*T)

    x_flat = hidden_states.reshape(T, H)
    vmem = lambda: pl.BlockSpec(memory_space=pltpu.MemorySpace.VMEM)

    # TODO(synk): at real Llama sizes, stream N/K-tiled, double-buffered weight blocks
    # instead of whole-array VMEM residency (v7x only has 64 MiB of VMEM).
    out_flat = pl.pallas_call(
        decoder_layer_kernel,
        out_shape=jax.ShapeDtypeStruct((T, H), jnp.float32),
        in_specs=[vmem() for _ in range(17)],
        out_specs=vmem(),
    )(x_flat, g1, g2, cos_t, sin_t, bias_t, kvmask, seg,
      wq_s, wqr_s, wk_b, wkr_b, wv_b, wo_b, wg_b, wu_b, wd_b)
    return out_flat.reshape(B, S, H)


# ----------------------- plain-JAX f32 reference -----------------------
def reference(x, params, cos, sin):
    g1, g2, wq, wk, wv, wo, wg, wu, wd = params

    def rmsnorm(t, g):
        return t * jax.lax.rsqrt(jnp.mean(t * t, -1, keepdims=True) + EPS) * g[0]

    def rope_full(t, nheads):
        t = t.reshape(B, S, nheads, HD)
        x1, x2 = t[..., :HD // 2], t[..., HD // 2:]
        rot = jnp.concatenate([-x2, x1], axis=-1)
        return t * cos[None, :, None, :] + rot * sin[None, :, None, :]

    h1 = rmsnorm(x, g1)
    q = rope_full(h1 @ wq, NH)
    k = rope_full(h1 @ wk, NKV)
    v = (h1 @ wv).reshape(B, S, NKV, HD)
    k = jnp.repeat(k, NH // NKV, axis=2)
    v = jnp.repeat(v, NH // NKV, axis=2)
    s = jnp.einsum('bqhd,bkhd->bhqk', q, k) / math.sqrt(HD)
    mask = jnp.tril(jnp.ones((S, S), bool))
    s = jnp.where(mask[None, None], s, -1e30)
    p = jax.nn.softmax(s, axis=-1)
    attn = jnp.einsum('bhqk,bkhd->bqhd', p, v).reshape(B, S, H)
    x2 = attn @ wo + x
    h2 = rmsnorm(x2, g2)
    return (jax.nn.silu(h2 @ wg) * (h2 @ wu)) @ wd + x2


# ----------------------- main -----------------------
if __name__ == "__main__":
    key = jax.random.PRNGKey(0)
    ks = jax.random.split(key, 10)
    init = lambda k, shape: (0.02 * jax.random.normal(k, shape)).astype(jnp.float32)

    hidden_states = jax.random.normal(ks[0], (B, S, H), dtype=jnp.float32)
    g1 = jnp.ones((1, H), jnp.float32)
    g2 = jnp.ones((1, H), jnp.float32)
    wq = init(ks[1], (H, NH * HD))
    wk = init(ks[2], (H, NKV * HD))
    wv = init(ks[3], (H, NKV * HD))
    wo = init(ks[4], (H, H))
    wg = init(ks[5], (H, I))
    wu = init(ks[6], (H, I))
    wd = init(ks[7], (I, H))
    params = (g1, g2, wq, wk, wv, wo, wg, wu, wd)

    out = llama_decoder_layer(hidden_states, params)
    out = jax.block_until_ready(out)

    # reference RoPE tables (position_ids = arange(S) per batch, rotary_dim = head_dim)
    inv_freq = 1.0 / (ROPE_THETA ** (np.arange(0, HD, 2, dtype=np.float32) / HD))
    pos = np.arange(S, dtype=np.float32)
    freqs = np.outer(pos, inv_freq)
    emb = np.concatenate([freqs, freqs], axis=-1)
    cos = jnp.asarray(np.cos(emb), jnp.float32)
    sin = jnp.asarray(np.sin(emb), jnp.float32)

    ref = reference(hidden_states, params, cos, sin)
    # tolerance covers bf16 MXU operands + approx reciprocal (observed error ~1e-3)
    np.testing.assert_allclose(np.asarray(out), np.asarray(ref), rtol=1e-2, atol=1e-2)

    print("KERNEL_OK")
</pallas_src>

<mosaic_0001>
module attributes {stable_mosaic.version = 11 : i64} {
  func.func @decoder_layer_kernel(%arg0: memref<16x32xf32, #tpu.memory_space<vmem>>, %arg1: memref<1x32xf32, #tpu.memory_space<vmem>>, %arg2: memref<1x32xf32, #tpu.memory_space<vmem>>, %arg3: memref<16x32xf32, #tpu.memory_space<vmem>>, %arg4: memref<16x32xf32, #tpu.memory_space<vmem>>, %arg5: memref<16x64xf32, #tpu.memory_space<vmem>>, %arg6: memref<64x32xf32, #tpu.memory_space<vmem>>, %arg7: memref<64x64xf32, #tpu.memory_space<vmem>>, %arg8: memref<32x32xbf16, #tpu.memory_space<vmem>>, %arg9: memref<32x32xbf16, #tpu.memory_space<vmem>>, %arg10: memref<32x32xbf16, #tpu.memory_space<vmem>>, %arg11: memref<32x32xbf16, #tpu.memory_space<vmem>>, %arg12: memref<32x32xbf16, #tpu.memory_space<vmem>>, %arg13: memref<32x32xbf16, #tpu.memory_space<vmem>>, %arg14: memref<32x64xbf16, #tpu.memory_space<vmem>>, %arg15: memref<32x64xbf16, #tpu.memory_space<vmem>>, %arg16: memref<64x32xbf16, #tpu.memory_space<vmem>>, %arg17: memref<16x32xf32, #tpu.memory_space<vmem>>) attributes {dimension_semantics = [], scalar_prefetch = 0 : i64, scratch_operands = 0 : i64, tpu.core_type = #tpu.core_type<tc>} {
    %c0 = arith.constant 0 : index
    %c0_0 = arith.constant 0 : index
    %0 = vector.load %arg0[%c0, %c0_0] : memref<16x32xf32, #tpu.memory_space<vmem>>, vector<16x32xf32>
    %1 = arith.mulf %0, %0 : vector<16x32xf32>
    %cst = arith.constant dense<0.000000e+00> : vector<16xf32>
    %2 = vector.multi_reduction <add>, %1, %cst [1] : vector<16x32xf32> to vector<16xf32>
    %3 = vector.shape_cast %2 : vector<16xf32> to vector<16x1xf32>
    %cst_1 = arith.constant 3.200000e+01 : f32
    %4 = vector.broadcast %cst_1 : f32 to vector<16x1xf32>
    %5 = arith.divf %3, %4 : vector<16x1xf32>
    %cst_2 = arith.constant 9.99999997E-7 : f32
    %6 = vector.broadcast %cst_2 : f32 to vector<16x1xf32>
    %7 = arith.addf %5, %6 : vector<16x1xf32>
    %8 = math.rsqrt %7 : vector<16x1xf32>
    %9 = vector.broadcast %8 : vector<16x1xf32> to vector<16x32xf32>
    %10 = arith.mulf %0, %9 : vector<16x32xf32>
    %c0_3 = arith.constant 0 : index
    %c0_4 = arith.constant 0 : index
    %11 = vector.load %arg1[%c0_3, %c0_4] : memref<1x32xf32, #tpu.memory_space<vmem>>, vector<1x32xf32>
    %12 = vector.broadcast %11 : vector<1x32xf32> to vector<16x32xf32>
    %13 = arith.mulf %10, %12 : vector<16x32xf32>
    %14 = arith.truncf %13 : vector<16x32xf32> to vector<16x32xbf16>
    %c0_5 = arith.constant 0 : index
    %c0_6 = arith.constant 0 : index
    %15 = vector.load %arg8[%c0_5, %c0_6] : memref<32x32xbf16, #tpu.memory_space<vmem>>, vector<32x32xbf16>
    %cst_7 = arith.constant dense<0.000000e+00> : vector<16x32xf32>
    %16 = tpu.matmul %14, %15, %cst_7 {dimension_numbers = #tpu.dot_dimension_numbers<[1], [0], [0], [1], [0, 0, 1, 1], [], []>} : vector<16x32xbf16>, vector<32x32xbf16>, vector<16x32xf32> -> vector<16x32xf32>
    %c0_8 = arith.constant 0 : index
    %c0_9 = arith.constant 0 : index
    %17 = vector.load %arg9[%c0_8, %c0_9] : memref<32x32xbf16, #tpu.memory_space<vmem>>, vector<32x32xbf16>
    %cst_10 = arith.constant dense<0.000000e+00> : vector<16x32xf32>
    %18 = tpu.matmul %14, %17, %cst_10 {dimension_numbers = #tpu.dot_dimension_numbers<[1], [0], [0], [1], [0, 0, 1, 1], [], []>} : vector<16x32xbf16>, vector<32x32xbf16>, vector<16x32xf32> -> vector<16x32xf32>
    %c0_11 = arith.constant 0 : index
    %c0_12 = arith.constant 0 : index
    %19 = vector.load %arg10[%c0_11, %c0_12] : memref<32x32xbf16, #tpu.memory_space<vmem>>, vector<32x32xbf16>
    %cst_13 = arith.constant dense<0.000000e+00> : vector<16x32xf32>
    %20 = tpu.matmul %14, %19, %cst_13 {dimension_numbers = #tpu.dot_dimension_numbers<[1], [0], [0], [1], [0, 0, 1, 1], [], []>} : vector<16x32xbf16>, vector<32x32xbf16>, vector<16x32xf32> -> vector<16x32xf32>
    %c0_14 = arith.constant 0 : index
    %c0_15 = arith.constant 0 : index
    %21 = vector.load %arg11[%c0_14, %c0_15] : memref<32x32xbf16, #tpu.memory_space<vmem>>, vector<32x32xbf16>
    %cst_16 = arith.constant dense<0.000000e+00> : vector<16x32xf32>
    %22 = tpu.matmul %14, %21, %cst_16 {dimension_numbers = #tpu.dot_dimension_numbers<[1], [0], [0], [1], [0, 0, 1, 1], [], []>} : vector<16x32xbf16>, vector<32x32xbf16>, vector<16x32xf32> -> vector<16x32xf32>
    %c0_17 = arith.constant 0 : index
    %c0_18 = arith.constant 0 : index
    %23 = vector.load %arg12[%c0_17, %c0_18] : memref<32x32xbf16, #tpu.memory_space<vmem>>, vector<32x32xbf16>
    %cst_19 = arith.constant dense<0.000000e+00> : vector<16x32xf32>
    %24 = tpu.matmul %14, %23, %cst_19 {dimension_numbers = #tpu.dot_dimension_numbers<[1], [0], [0], [1], [0, 0, 1, 1], [], []>} : vector<16x32xbf16>, vector<32x32xbf16>, vector<16x32xf32> -> vector<16x32xf32>
    %c0_20 = arith.constant 0 : index
    %c0_21 = arith.constant 0 : index
    %25 = vector.load %arg3[%c0_20, %c0_21] : memref<16x32xf32, #tpu.memory_space<vmem>>, vector<16x32xf32>
    %c0_22 = arith.constant 0 : index
    %c0_23 = arith.constant 0 : index
    %26 = vector.load %arg4[%c0_22, %c0_23] : memref<16x32xf32, #tpu.memory_space<vmem>>, vector<16x32xf32>
    %27 = arith.mulf %16, %25 : vector<16x32xf32>
    %28 = arith.mulf %18, %26 : vector<16x32xf32>
    %29 = arith.addf %27, %28 : vector<16x32xf32>
    %30 = arith.truncf %29 : vector<16x32xf32> to vector<16x32xbf16>
    %31 = arith.mulf %20, %25 : vector<16x32xf32>
    %32 = arith.mulf %22, %26 : vector<16x32xf32>
    %33 = arith.addf %31, %32 : vector<16x32xf32>
    %c0_24 = arith.constant 0 : index
    %c0_25 = arith.constant 0 : index
    %34 = vector.load %arg6[%c0_24, %c0_25] : memref<64x32xf32, #tpu.memory_space<vmem>>, vector<64x32xf32>
    %35 = tpu.concatenate %33, %33, %33, %33 in 0 : vector<16x32xf32>, vector<16x32xf32>, vector<16x32xf32>, vector<16x32xf32> -> vector<64x32xf32>
    %36 = arith.mulf %35, %34 : vector<64x32xf32>
    %37 = arith.truncf %36 : vector<64x32xf32> to vector<64x32xbf16>
    %38 = tpu.concatenate %24, %24, %24, %24 in 0 : vector<16x32xf32>, vector<16x32xf32>, vector<16x32xf32>, vector<16x32xf32> -> vector<64x32xf32>
    %39 = arith.mulf %38, %34 : vector<64x32xf32>
    %40 = arith.truncf %39 : vector<64x32xf32> to vector<64x32xbf16>
    %cst_26 = arith.constant dense<0.000000e+00> : vector<16x64xf32>
    %41 = tpu.matmul %30, %37, %cst_26 {dimension_numbers = #tpu.dot_dimension_numbers<[1], [1], [0], [0], [0, 0, 1, 0], [], []>} : vector<16x32xbf16>, vector<64x32xbf16>, vector<16x64xf32> -> vector<16x64xf32>
    %c0_27 = arith.constant 0 : index
    %c0_28 = arith.constant 0 : index
    %42 = vector.load %arg5[%c0_27, %c0_28] : memref<16x64xf32, #tpu.memory_space<vmem>>, vector<16x64xf32>
    %43 = arith.addf %41, %42 : vector<16x64xf32>
    %cst_29 = arith.constant dense<0xFF800000> : vector<16xf32>
    %44 = vector.multi_reduction <maximumf>, %43, %cst_29 [1] : vector<16x64xf32> to vector<16xf32>
    %45 = vector.shape_cast %44 : vector<16xf32> to vector<16x1xf32>
    %46 = vector.broadcast %45 : vector<16x1xf32> to vector<16x64xf32>
    %47 = arith.subf %43, %46 : vector<16x64xf32>
    %48 = math.exp %47 : vector<16x64xf32>
    %c0_30 = arith.constant 0 : index
    %c0_31 = arith.constant 0 : index
    %49 = vector.load %arg7[%c0_30, %c0_31] : memref<64x64xf32, #tpu.memory_space<vmem>>, vector<64x64xf32>
    %cst_32 = arith.constant dense<0.000000e+00> : vector<16x64xf32>
    %50 = tpu.matmul %48, %49, %cst_32 {dimension_numbers = #tpu.dot_dimension_numbers<[1], [0], [0], [1], [0, 0, 1, 1], [], []>} : vector<16x64xf32>, vector<64x64xf32>, vector<16x64xf32> -> vector<16x64xf32>
    %51 = tpu.reciprocal %50 {approx = true} : vector<16x64xf32> -> vector<16x64xf32>
    %52 = arith.mulf %48, %51 : vector<16x64xf32>
    %53 = arith.truncf %52 : vector<16x64xf32> to vector<16x64xbf16>
    %cst_33 = arith.constant dense<0.000000e+00> : vector<16x32xf32>
    %54 = tpu.matmul %53, %40, %cst_33 {dimension_numbers = #tpu.dot_dimension_numbers<[1], [0], [0], [1], [0, 0, 1, 1], [], []>} : vector<16x64xbf16>, vector<64x32xbf16>, vector<16x32xf32> -> vector<16x32xf32>
    %55 = arith.truncf %54 : vector<16x32xf32> to vector<16x32xbf16>
    %c0_34 = arith.constant 0 : index
    %c0_35 = arith.constant 0 : index
    %56 = vector.load %arg13[%c0_34, %c0_35] : memref<32x32xbf16, #tpu.memory_space<vmem>>, vector<32x32xbf16>
    %cst_36 = arith.constant dense<0.000000e+00> : vector<16x32xf32>
    %57 = tpu.matmul %55, %56, %cst_36 {dimension_numbers = #tpu.dot_dimension_numbers<[1], [0], [0], [1], [0, 0, 1, 1], [], []>} : vector<16x32xbf16>, vector<32x32xbf16>, vector<16x32xf32> -> vector<16x32xf32>
    %58 = arith.addf %57, %0 : vector<16x32xf32>
    %59 = arith.mulf %58, %58 : vector<16x32xf32>
    %cst_37 = arith.constant dense<0.000000e+00> : vector<16xf32>
    %60 = vector.multi_reduction <add>, %59, %cst_37 [1] : vector<16x32xf32> to vector<16xf32>
    %61 = vector.shape_cast %60 : vector<16xf32> to vector<16x1xf32>
    %cst_38 = arith.constant 3.200000e+01 : f32
    %62 = vector.broadcast %cst_38 : f32 to vector<16x1xf32>
    %63 = arith.divf %61, %62 : vector<16x1xf32>
    %cst_39 = arith.constant 9.99999997E-7 : f32
    %64 = vector.broadcast %cst_39 : f32 to vector<16x1xf32>
    %65 = arith.addf %63, %64 : vector<16x1xf32>
    %66 = math.rsqrt %65 : vector<16x1xf32>
    %67 = vector.broadcast %66 : vector<16x1xf32> to vector<16x32xf32>
    %68 = arith.mulf %58, %67 : vector<16x32xf32>
    %c0_40 = arith.constant 0 : index
    %c0_41 = arith.constant 0 : index
    %69 = vector.load %arg2[%c0_40, %c0_41] : memref<1x32xf32, #tpu.memory_space<vmem>>, vector<1x32xf32>
    %70 = vector.broadcast %69 : vector<1x32xf32> to vector<16x32xf32>
    %71 = arith.mulf %68, %70 : vector<16x32xf32>
    %72 = arith.truncf %71 : vector<16x32xf32> to vector<16x32xbf16>
    %c0_42 = arith.constant 0 : index
    %c0_43 = arith.constant 0 : index
    %73 = vector.load %arg14[%c0_42, %c0_43] : memref<32x64xbf16, #tpu.memory_space<vmem>>, vector<32x64xbf16>
    %cst_44 = arith.constant dense<0.000000e+00> : vector<16x64xf32>
    %74 = tpu.matmul %72, %73, %cst_44 {dimension_numbers = #tpu.dot_dimension_numbers<[1], [0], [0], [1], [0, 0, 1, 1], [], []>} : vector<16x32xbf16>, vector<32x64xbf16>, vector<16x64xf32> -> vector<16x64xf32>
    %c0_45 = arith.constant 0 : index
    %c0_46 = arith.constant 0 : index
    %75 = vector.load %arg15[%c0_45, %c0_46] : memref<32x64xbf16, #tpu.memory_space<vmem>>, vector<32x64xbf16>
    %cst_47 = arith.constant dense<0.000000e+00> : vector<16x64xf32>
    %76 = tpu.matmul %72, %75, %cst_47 {dimension_numbers = #tpu.dot_dimension_numbers<[1], [0], [0], [1], [0, 0, 1, 1], [], []>} : vector<16x32xbf16>, vector<32x64xbf16>, vector<16x64xf32> -> vector<16x64xf32>
    %77 = arith.negf %74 : vector<16x64xf32>
    %78 = math.exp %77 : vector<16x64xf32>
    %cst_48 = arith.constant 1.000000e+00 : f32
    %79 = vector.broadcast %cst_48 : f32 to vector<16x64xf32>
    %80 = arith.addf %79, %78 : vector<16x64xf32>
    %81 = arith.divf %79, %80 : vector<16x64xf32>
    %82 = arith.mulf %74, %81 : vector<16x64xf32>
    %83 = arith.mulf %82, %76 : vector<16x64xf32>
    %84 = arith.truncf %83 : vector<16x64xf32> to vector<16x64xbf16>
    %c0_49 = arith.constant 0 : index
    %c0_50 = arith.constant 0 : index
    %85 = vector.load %arg16[%c0_49, %c0_50] : memref<64x32xbf16, #tpu.memory_space<vmem>>, vector<64x32xbf16>
    %cst_51 = arith.constant dense<0.000000e+00> : vector<16x32xf32>
    %86 = tpu.matmul %84, %85, %cst_51 {dimension_numbers = #tpu.dot_dimension_numbers<[1], [0], [0], [1], [0, 0, 1, 1], [], []>} : vector<16x64xbf16>, vector<64x32xbf16>, vector<16x32xf32> -> vector<16x32xf32>
    %87 = arith.addf %86, %58 : vector<16x32xf32>
    %c0_52 = arith.constant 0 : index
    %c0_53 = arith.constant 0 : index
    %88 = vector.load %arg17[%c0_52, %c0_53] : memref<16x32xf32, #tpu.memory_space<vmem>>, vector<16x32xf32>
    tpu.vector_store %arg17[%c0_52, %c0_53], %87 {strides = array<i32>} : memref<16x32xf32, #tpu.memory_space<vmem>>, vector<16x32xf32>,
    return
  }
}

</mosaic_0001>

<bundles_post_ra>
// kernel: tpu_custom_call.1
= control target key start
LH: loop header
LB: loop body
LE: loop exit
PB: predicated region body
PF: predicated region fallthrough
CT: control target
= control target key end

     0   :  { %s1526_s0 = inlined_call_operand.vmem [shape: f32[16,32], index: 0, kind: input, shape index: {}]   ;;  %s1527_s1 = inlined_call_operand.vmem [shape: f32[1,32], index: 1, kind: input, shape index: {}]   ;;  %s1528_s2 = inlined_call_operand.vmem [shape: f32[1,32], index: 2, kind: input, shape index: {}]   ;;  %s1529_s3 = inlined_call_operand.vmem [shape: f32[16,32], index: 3, kind: input, shape index: {}]   ;;  %s1530_s4 = inlined_call_operand.vmem [shape: f32[16,32], index: 4, kind: input, shape index: {}]   ;;  %s1531_s5 = inlined_call_operand.hbm [shape: f32[16,64], index: 5, kind: input, shape index: {}]   ;;  %s1532_s6 = inlined_call_operand.vmem [shape: f32[64,32], index: 6, kind: input, shape index: {}]   ;;  %s1533_s7 = inlined_call_operand.vmem [shape: f32[64,64], index: 7, kind: input, shape index: {}]   ;;  %s1534_s8 = inlined_call_operand.hbm [shape: bf16[32,32], index: 8, kind: input, shape index: {}]   ;;  %s1535_s9 = inlined_call_operand.hbm [shape: bf16[32,32], index: 9, kind: input, shape index: {}]   ;;  %s1536_s10 = inlined_call_operand.hbm [shape: bf16[32,32], index: 10, kind: input, shape index: {}]   ;;  %s1537_s11 = inlined_call_operand.hbm [shape: bf16[32,32], index: 11, kind: input, shape index: {}]   ;;  %s1538_s12 = inlined_call_operand.hbm [shape: bf16[32,32], index: 12, kind: input, shape index: {}]   ;;  %s1539_s13 = inlined_call_operand.hbm [shape: bf16[32,32], index: 13, kind: input, shape index: {}]   ;;  %s1540_s14 = inlined_call_operand.hbm [shape: bf16[32,64], index: 14, kind: input, shape index: {}]   ;;  %s1541_s15 = inlined_call_operand.hbm [shape: bf16[32,64], index: 15, kind: input, shape index: {}]   ;;  %s1542_s16 = inlined_call_operand.vmem [shape: bf16[64,32], index: 16, kind: input, shape index: {}]   ;;  %s1543_s17 = inlined_call_operand.hbm [shape: f32[16,32], index: 17, kind: output, shape index: {}]  }
   0x1   :  { %1545 = sst [smem:[#allocation24_spill]] %s1526_s0 }
   0x2   :  { %1546 = sst [smem:[#allocation25_spill]] %s1527_s1 }
   0x3   :  { %22 = vsyncpa [#allocation3], 0 }
   0x4   :  { %23 = vsyncpa [#allocation6], 0 }
   0x5   :  { %24 = vsyncpa [#allocation9], 0 }
   0x6   :  { %25 = vsyncpa [#allocation12], 0 }
   0x7   :  { %26 = vsyncpa [#allocation15], 0  ;;  %s59_s26 = sshll.u32 %s1534_s8, 4  ;;  %s60_s26 = int_to_ptr.hbm [resolvable:$true] %s59_s26 }
   0x8   :  { %27 = vsyncpa [#allocation4], 0  ;;  %s1219_s27 = smov [#allocation5]   ;;  %s85_s30 = sshll.u32 %s1536_s10, 4  ;;  %s86_s30 = int_to_ptr.hbm [resolvable:$true] %s85_s30 }
   0x9   :  { %s61_s28 = sshll.u32 %s1219_s27, 4  ;;  %s1220_s18 = smov 64   ;;  %s62_s28 = int_to_ptr.vmem [resolvable:$true] %s61_s28 }
   0xa   :  { %s1221_s19 = smov 4   ;;  %s1222_s1 = smov [#allocation8]  }
   0xb   :  { %67 = dma.hbm_to_vmem [thread:$0]  %s60_s26, 256, %s62_s28, [#allocation6], %s1220_s18, %s1220_s18, %s1221_s19  }
   0xc   :  { %s87_s20 = sshll.u32 %s1222_s1, 4  ;;  %s111_s22 = sshll.u32 %s1538_s12, 4  ;;  %s88_s20 = int_to_ptr.vmem [resolvable:$true] %s87_s20  ;;  %s112_s22 = int_to_ptr.hbm [resolvable:$true] %s111_s22 }
   0xd   :  { %93 = dma.hbm_to_vmem [thread:$0]  %s86_s30, 256, %s88_s20, [#allocation9], %s1220_s18, %s1220_s18, %s1221_s19  }
   0xe   :  { %s137_s24 = sshll.u32 %s1540_s14, 4  ;;  %s1223_s25 = smov [#allocation11]   ;;  %s138_s24 = int_to_ptr.hbm [resolvable:$true] %s137_s24 }
   0xf   :  { %s113_s27 = sshll.u32 %s1223_s25, 4  ;;  %s1224_s26 = smov [#allocation14]   ;;  %s114_s27 = int_to_ptr.vmem [resolvable:$true] %s113_s27 }
  0x10   :  { %119 = dma.hbm_to_vmem [thread:$0]  %s112_s22, 256, %s114_s27, [#allocation12], %s1220_s18, %s1220_s18, %s1221_s19  }
  0x11   :  { %s139_s12 = sshll.u32 %s1224_s26, 4  ;;  %s42_s0 = sshll.u32 %s1531_s5, 4  ;;  %s140_s12 = int_to_ptr.vmem [resolvable:$true] %s139_s12  ;;  %s43_s0 = int_to_ptr.hbm [resolvable:$true] %s42_s0 }
  0x12   :  { %145 = dma.hbm_to_vmem [thread:$0]  %s138_s24, 256, %s140_s12, [#allocation15], %s1220_s18, %s1220_s18, %s1221_s19  }
  0x13   :  { %s1225_s14 = smov [#allocation2]   ;;  %s72_s21 = sshll.u32 %s1535_s9, 4  ;;  %s73_s21 = int_to_ptr.hbm [resolvable:$true] %s72_s21 }
  0x14   :  { %s44_s30 = sshll.u32 %s1225_s14, 4  ;;  %s1226_s8 = smov 128   ;;  %s45_s30 = int_to_ptr.vmem [resolvable:$true] %s44_s30 }
  0x15   :  { %s1227_s22 = smov 8   ;;  %s1228_s5 = smov [#allocation7]  }
  0x16   :  { %50 = dma.hbm_to_vmem [thread:$0]  %s43_s0, 256, %s45_s30, [#allocation3], %s1226_s8, %s1226_s8, %s1227_s22  }
  0x17   :  { %s74_s10 = sshll.u32 %s1228_s5, 4  ;;  %s98_s24 = sshll.u32 %s1537_s11, 4  ;;  %s75_s10 = int_to_ptr.vmem [resolvable:$true] %s74_s10  ;;  %s99_s24 = int_to_ptr.hbm [resolvable:$true] %s98_s24 }
  0x18   :  { %80 = dma.hbm_to_vmem [thread:$0]  %s73_s21, 256, %s75_s10, [#allocation6], %s1220_s18, %s1220_s18, %s1221_s19  }
  0x19   :  { %s124_s26 = sshll.u32 %s1539_s13, 4  ;;  %s1229_s12 = smov [#allocation10]   ;;  %s125_s26 = int_to_ptr.hbm [resolvable:$true] %s124_s26 }
  0x1a   :  { %s100_s28 = sshll.u32 %s1229_s12, 4  ;;  %s1230_s29 = smov [#allocation13]   ;;  %s101_s28 = int_to_ptr.vmem [resolvable:$true] %s100_s28 }
  0x1b   :  { %106 = dma.hbm_to_vmem [thread:$0]  %s99_s24, 256, %s101_s28, [#allocation9], %s1220_s18, %s1220_s18, %s1221_s19  }
  0x1c   :  { %s126_s11 = sshll.u32 %s1230_s29, 4  ;;  %s150_s30 = sshll.u32 %s1541_s15, 4  ;;  %s127_s11 = int_to_ptr.vmem [resolvable:$true] %s126_s11  ;;  %s151_s30 = int_to_ptr.hbm [resolvable:$true] %s150_s30 }
  0x1d   :  { %132 = dma.hbm_to_vmem [thread:$0]  %s125_s26, 256, %s127_s11, [#allocation12], %s1220_s18, %s1220_s18, %s1221_s19  }
  0x1e   :  { %s1231_s13 = smov [#allocation16]  }
  0x1f   :  { %s152_s1 = sshll.u32 %s1231_s13, 4  ;;  %s153_s1 = int_to_ptr.vmem [resolvable:$true] %s152_s1 }
  0x20   :  { %158 = dma.hbm_to_vmem [thread:$0]  %s151_s30, 256, %s153_s1, [#allocation15], %s1220_s18, %s1220_s18, %s1221_s19  }
  0x21   :  { %1207 = dma.done.wait [#allocation3], 256  }
  0x22   :  { %1208 = vsyncadd [#allocation3], 4294967040 }
  0x23   :  { %1209 = dma.done.wait [#allocation6], 512  }
  0x24   :  { %1210 = vsyncadd [#allocation6], 4294966784 }
  0x25   :  { %1211 = dma.done.wait [#allocation9], 512  }
  0x26   :  { %1212 = vsyncadd [#allocation9], 4294966784 }
  0x27   :  { %1213 = dma.done.wait [#allocation12], 512  }
  0x28   :  { %1214 = vsyncadd [#allocation12], 4294966784 }
  0x29   :  { %1215 = dma.done.wait [#allocation15], 512  }
  0x2a   :  { %1216 = vsyncadd [#allocation15], 4294966784  ;;  %s1547_s21 = sld [smem:[#allocation24_spill]]  ;;  %vm202_vm0 = vcmask 261120   ;;  %v1232_v6 = vmov 32.0   ;;  %v905_v12 = vld [vmem:[#allocation5 + $0x8] sm:$0xff] }
  0x2b   :  { %941 = vrcp.f32 %v1232_v6  ;;  %v907_v13 = vld [vmem:[#allocation7 + $0x8] sm:$0xff]  ;;  %v909_v14 = vld [vmem:[#allocation8 + $0x8] sm:$0xff]  ;;  %274 = vmatpush.bf16.msra.mxu0 %v905_v12  ;;  %v904_v18 = vld [vmem:[#allocation5] sm:$0xff]  ;;  %s1548_s23 = sld [smem:[#allocation25_spill]]  ;;  %vm482_vm8 = vcmask 523264   ;;  %s792_s24 = sshll.u32 %s1543_s17, 4  ;;  %s793_s24 = int_to_ptr.hbm [resolvable:$true] %s792_s24 }
  0x2c   :  { %v911_v15 = vld [vmem:[#allocation10 + $0x8] sm:$0xff]  ;;  %304 = vmatpush.bf16.msra.mxu1 %v907_v13  ;;  %334 = vmatpush.bf16.msra.mxu2 %v909_v14  ;;  %v906_v19 = vld [vmem:[#allocation7] sm:$0xff]  ;;  %v908_v20 = vld [vmem:[#allocation8] sm:$0xff] }
  0x2d   :  { %364 = vmatpush.bf16.msra.mxu3 %v911_v15  ;;  %v910_v22 = vld [vmem:[#allocation10] sm:$0xff]  ;;  %v913_v24 = vld [vmem:[#allocation11 + $0x8] sm:$0xff]  ;;  %v912_v26 = vld [vmem:[#allocation11] sm:$0xff] }
  0x2e   :  { %v402_v53 = vld [vmem:[%s1529_s3] sm:$0xff]  ;;  %v403_v57 = vld [vmem:[%s1529_s3 + $0x8] sm:$0xff] }
  0x2f   :  { %275 = vmatpush.bf16.msra.mxu0 %v904_v18  ;;  %v404_v54 = vld [vmem:[%s1530_s4] sm:$0xff]  ;;  %v405_v58 = vld [vmem:[%s1530_s4 + $0x8] sm:$0xff] }
  0x30   :  { %v1381_v0 = vld [vmem:[%s1547_s21] sm:$0xff]  ;;  %v1388_v2 = vld [vmem:[%s1547_s21 + $0x8] sm:$0xff]  ;;  %305 = vmatpush.bf16.msra.mxu1 %v906_v19  ;;  %335 = vmatpush.bf16.msra.mxu2 %v908_v20 }
  0x31   :  { %v200_v1 = vmul.f32 %v1381_v0, %v1381_v0  ;;  %v201_v4 = vmul.f32 %v1388_v2, %v1388_v2  ;;  %v942_v7 = vpop.eup %941  ;;  %365 = vmatpush.bf16.msra.mxu3 %v910_v22  ;;  %v939_v42 = vld [vmem:[%s1548_s23] ss:$0 sm:$0xff]  ;;  %v422_v22 = vld [vmem:[%s1532_s6 + $0x18] sm:$0xff] }
  0x32   :  { %v210_v8 = vmul.f32 32.0, %v942_v7  ;;  %vm214_vm1 = vweird.f32 %v942_v7 }
  0x33   :  { %v203_v3 = vsel %vm202_vm0, %v200_v1, 0.0  ;;  %v206_v5 = vsel %vm202_vm0, %v201_v4, 0.0  ;;  %394 = vmatpush.bf16.msrb.mxu0 %v913_v24  ;;  %v426_v4 = vld [vmem:[%s1532_s6 + $0x38] sm:$0xff]  ;;  %v421_v24 = vld [vmem:[%s1532_s6 + $0x10] sm:$0xff] }
  0x34   :  { %204 = vadd.xlane.f32.xlu0 %v203_v3  ;;  %v211_v9 = vsub.f32 1.0, %v210_v8  ;;  %v425_v3 = vld [vmem:[%s1532_s6 + $0x30] sm:$0xff]  ;;  %v424_v8 = vld [vmem:[%s1532_s6 + $0x28] sm:$0xff] }
  0x36   :  { %v212_v10 = vmul.f32 %v942_v7, %v211_v9 }
  0x37   :  { %395 = vmatpush.bf16.msrb.mxu0 %v912_v26 }
  0x38   :  { %v213_v11 = vadd.f32 %v942_v7, %v212_v10  ;;  %v423_v10 = vld [vmem:[%s1532_s6 + $0x20] sm:$0xff] }
  0x3a   :  { %v1394_v16 = vsel %vm214_vm1, %v942_v7, %v213_v11 }
  0x3c   :  { %207 = vadd.xlane.f32.xlu0 %v206_v5 }
  0xa7   :  { %v205_v17 = vpop.xlane.xlu0 %204 }
  0xa8   :  { %v216_v21 = vmul.f32 %v1394_v16, %v205_v17 }
  0xaa   :  { %v218_v23 = vadd.f32 1e-06, %v216_v21 }
  0xac   :  { %943 = vrsqrt.f32 %v218_v23  ;;  %vm226_vm3 = vweird.f32 %v218_v23 }
  0xaf   :  { %v208_v25 = vpop.xlane.xlu0 %207 }
  0xb0   :  { %v217_v27 = vmul.f32 %v1394_v16, %v208_v25 }
  0xb2   :  { %v944_v28 = vpop.eup %943  ;;  %v219_v29 = vadd.f32 1e-06, %v217_v27 }
  0xb3   :  { %v221_v30 = vmul.f32 %v944_v28, %v218_v23  ;;  %vm227_vm2 = vweird.f32 %v944_v28 }
  0xb4   :  { %945 = vrsqrt.f32 %v219_v29  ;;  %vm228_vm4 = vmor %vm226_vm3, %vm227_vm2  ;;  %vm236_vm6 = vweird.f32 %v219_v29 }
  0xb5   :  { %v222_v31 = vmul.f32 %v944_v28, %v221_v30 }
  0xb7   :  { %v223_v32 = vmul.f32 0.5, %v222_v31  ;;  %v420_v31 = vld [vmem:[%s1532_s6 + $0x8] sm:$0xff] }
  0xb9   :  { %v224_v33 = vsub.f32 1.5, %v223_v32 }
  0xba   :  { %v946_v34 = vpop.eup %945 }
  0xbb   :  { %v231_v35 = vmul.f32 %v946_v34, %v219_v29  ;;  %v225_v36 = vmul.f32 %v944_v28, %v224_v33  ;;  %vm237_vm5 = vweird.f32 %v946_v34 }
  0xbc   :  { %vm238_vm7 = vmor %vm236_vm6, %vm237_vm5 }
  0xbd   :  { %v232_v37 = vmul.f32 %v946_v34, %v231_v35  ;;  %v229_v39 = vsel %vm228_vm4, %v944_v28, %v225_v36  ;;  %v419_v35 = vld [vmem:[%s1532_s6] sm:$0xff] }
  0xbe   :  { %v240_v43 = vmul.f32 %v229_v39, %v1381_v0 }
  0xbf   :  { %v233_v38 = vmul.f32 0.5, %v232_v37 }
  0xc0   :  { %v246_v46 = vmul.f32 %v939_v42, %v240_v43 }
  0xc1   :  { %v234_v40 = vsub.f32 1.5, %v233_v38 }
  0xc3   :  { %v235_v41 = vmul.f32 %v946_v34, %v234_v40 }
  0xc5   :  { %v239_v44 = vsel %vm238_vm7, %v946_v34, %v235_v41 }
  0xc6   :  { %v241_v45 = vmul.f32 %v239_v44, %v1388_v2 }
  0xc8   :  { %v247_v47 = vmul.f32 %v939_v42, %v241_v45 }
  0xca   :  { %v248_v48 = vpack.c.bf16 %v247_v47, %v246_v46 }
  0xcc   :  { %817 = vmatmul.msk.bf16.vlgmr.msra.gmra.mxu0 %vm202_vm0, %v248_v48  ;;  %826 = vmatmul.msk.bf16.vlgmr.msra.gmra.mxu1 %vm202_vm0, %v248_v48 }
  0xcd   :  { %835 = vmatmul.msk.bf16.vlgmr.msra.gmra.mxu2 %vm202_vm0, %v248_v48  ;;  %844 = vmatmul.msk.bf16.vlgmr.msra.gmra.mxu3 %vm202_vm0, %v248_v48 }
  0xdc   :  { %853 = vmatmul.msk.bf16.vlgmr.msrb.gmra.mxu0 %vm202_vm0, %v248_v48 }
 0x149   :  { %v1408_v49 = vpop.f32.mrf.mxu0  ;;  %v307_v28 = vpop.f32.mrf.mxu1 }
 0x14a   :  { %v406_v45 = vmul.f32 %v402_v53, %v1408_v49  ;;  %v408_v46 = vmul.f32 %v404_v54, %v307_v28  ;;  %v500_v49 = vld [vmem:[%s1533_s7 + $0x28] sm:$0xff] }
 0x150   :  { %v337_v50 = vpop.f32.mrf.mxu2  ;;  %v367_v51 = vpop.f32.mrf.mxu3 }
 0x151   :  { %v279_v52 = vpop.f32.mrf.mxu0  ;;  %v413_v55 = vmul.f32 %v402_v53, %v337_v50  ;;  %v415_v56 = vmul.f32 %v404_v54, %v367_v51  ;;  %v309_v41 = vpop.f32.mrf.mxu1  ;;  %v410_v50 = vadd.f32 %v408_v46, %v406_v45  ;;  %v451_v53 = vld [vmem:[#allocation2] sm:$0xff] }
 0x152   :  { %v407_v43 = vmul.f32 %v403_v57, %v279_v52  ;;  %v409_v44 = vmul.f32 %v405_v58, %v309_v41  ;;  %v501_v52 = vld [vmem:[%s1533_s7 + $0x30] sm:$0xff] }
 0x153   :  { %v417_v61 = vadd.f32 %v415_v56, %v413_v55  ;;  %v502_v55 = vld [vmem:[%s1533_s7 + $0x38] sm:$0xff] }
 0x154   :  { %v411_v48 = vadd.f32 %v409_v44, %v407_v43  ;;  %517 = vmatpush.msrb.mxu2 %v502_v55 }
 0x155   :  { %v433_v6 = vmul.f32 %v425_v3, %v417_v61  ;;  %v431_v17 = vmul.f32 %v423_v10, %v417_v61  ;;  %v429_v30 = vmul.f32 %v421_v24, %v417_v61  ;;  %v427_v40 = vmul.f32 %v419_v35, %v417_v61 }
 0x156   :  { %v412_v51 = vpack.c.bf16 %v411_v48, %v410_v50  ;;  %518 = vmatpush.msrb.mxu2 %v501_v52 }
 0x158   :  { %v339_v59 = vpop.f32.mrf.mxu2  ;;  %v369_v60 = vpop.f32.mrf.mxu3  ;;  %519 = vmatpush.msrb.mxu2 %v500_v49 }
 0x159   :  { %v414_v62 = vmul.f32 %v403_v57, %v339_v59  ;;  %v416_v63 = vmul.f32 %v405_v58, %v369_v60  ;;  %v397_v1 = vpop.f32.mrf.mxu0  ;;  %v452_v58 = vld [vmem:[#allocation2 + $0x8] sm:$0xff] }
 0x15a   :  { %v445_v14 = vmul.f32 %v425_v3, %v397_v1  ;;  %v443_v21 = vmul.f32 %v423_v10, %v397_v1  ;;  %v441_v29 = vmul.f32 %v421_v24, %v397_v1  ;;  %v439_v36 = vmul.f32 %v419_v35, %v397_v1  ;;  %v497_v1 = vld [vmem:[%s1533_s7 + $0x10] sm:$0xff]  ;;  %v496_v3 = vld [vmem:[%s1533_s7 + $0x8] sm:$0xff] }
 0x15b   :  { %v418_v5 = vadd.f32 %v416_v63, %v414_v62  ;;  %v499_v62 = vld [vmem:[%s1533_s7 + $0x20] sm:$0xff]  ;;  %v498_v63 = vld [vmem:[%s1533_s7 + $0x18] sm:$0xff]  ;;  %v919_v35 = vld [vmem:[#allocation16 + $0x8] sm:$0xff] }
 0x15c   :  { %520 = vmatpush.msrb.mxu2 %v499_v62  ;;  %v922_v62 = vld [vmem:[%s1542_s16 + $0x10] sm:$0xff] }
 0x15d   :  { %v434_v7 = vmul.f32 %v426_v4, %v418_v5  ;;  %v432_v13 = vmul.f32 %v424_v8, %v418_v5  ;;  %v430_v27 = vmul.f32 %v422_v22, %v418_v5  ;;  %v428_v39 = vmul.f32 %v420_v31, %v418_v5 }
 0x15e   :  { %521 = vmatpush.msrb.mxu2 %v498_v63 }
 0x15f   :  { %v438_v9 = vpack.c.bf16 %v434_v7, %v433_v6  ;;  %v437_v20 = vpack.c.bf16 %v432_v13, %v431_v17  ;;  %v436_v34 = vpack.c.bf16 %v430_v27, %v429_v30  ;;  %v435_v42 = vpack.c.bf16 %v428_v39, %v427_v40  ;;  %v915_v13 = vld [vmem:[#allocation13 + $0x8] sm:$0xff] }
 0x160   :  { %522 = vmatpush.msrb.mxu2 %v497_v1  ;;  %580 = vmatpush.bf16.msra.mxu0 %v915_v13 }
 0x161   :  { %v399_v11 = vpop.f32.mrf.mxu0  ;;  %v466_v12 = vsel %vm202_vm0, %v438_v9, 0  ;;  %v463_v26 = vsel %vm202_vm0, %v437_v20, 0  ;;  %v460_v38 = vsel %vm202_vm0, %v436_v34, 0  ;;  %v457_v47 = vsel %vm202_vm0, %v435_v42, 0  ;;  %v917_v34 = vld [vmem:[#allocation14 + $0x8] sm:$0xff] }
 0x162   :  { %472 = vmatpush.bf16.xpose.msrb.mxu1 %v466_v12  ;;  %v446_v15 = vmul.f32 %v426_v4, %v399_v11  ;;  %v444_v19 = vmul.f32 %v424_v8, %v399_v11  ;;  %v442_v25 = vmul.f32 %v422_v22, %v399_v11  ;;  %v440_v33 = vmul.f32 %v420_v31, %v399_v11  ;;  %v495_v4 = vld [vmem:[%s1533_s7] sm:$0xff] }
 0x163   :  { %523 = vmatpush.msrb.mxu2 %v496_v3  ;;  %v914_v22 = vld [vmem:[#allocation13] sm:$0xff]  ;;  %v921_v3 = vld [vmem:[%s1542_s16 + $0x8] sm:$0xff] }
 0x164   :  { %v450_v18 = vpack.c.bf16 %v446_v15, %v445_v14  ;;  %v449_v23 = vpack.c.bf16 %v444_v19, %v443_v21  ;;  %v448_v32 = vpack.c.bf16 %v442_v25, %v441_v29  ;;  %v447_v37 = vpack.c.bf16 %v440_v33, %v439_v36  ;;  %581 = vmatpush.bf16.msra.mxu0 %v914_v22  ;;  %v916_v36 = vld [vmem:[#allocation14] sm:$0xff] }
 0x165   :  { %524 = vmatpush.msrb.mxu2 %v495_v4  ;;  %v920_v4 = vld [vmem:[%s1542_s16] sm:$0xff] }
 0x166   :  { %544 = vmatpush.bf16.msrb.mxu3 %v450_v18 }
 0x167   :  { %654 = vmatpush.bf16.msra.mxu2 %v917_v34 }
 0x16a   :  { %473 = vmatpush.bf16.xpose.msrb.mxu1 %v463_v26  ;;  %545 = vmatpush.bf16.msrb.mxu3 %v449_v23 }
 0x16b   :  { %655 = vmatpush.bf16.msra.mxu2 %v916_v36 }
 0x16e   :  { %546 = vmatpush.bf16.msrb.mxu3 %v448_v32 }
 0x172   :  { %474 = vmatpush.bf16.xpose.msrb.mxu1 %v460_v38  ;;  %547 = vmatpush.bf16.msrb.mxu3 %v447_v37  ;;  %v918_v37 = vld [vmem:[#allocation16] sm:$0xff] }
 0x176   :  { %684 = vmatpush.bf16.msra.mxu3 %v919_v35 }
 0x17a   :  { %475 = vmatpush.bf16.xpose.msrb.mxu1 %v457_v47  ;;  %685 = vmatpush.bf16.msra.mxu3 %v918_v37 }
 0x181   :  { %854 = vmatmul.msk.bf16.vlgmr.msrb.gmra.mxu1 %vm202_vm0, %v412_v51 }
 0x1fe   :  { %v477_v54 = vpop.f32.mrf.mxu1 }
 0x1ff   :  { %v478_v56 = vadd.f32 %v477_v54, %v451_v53 }
 0x201   :  { %v483_v57 = vsel %vm482_vm8, %v478_v56, -inf }
 0x202   :  { %484 = vmax.xlane.f32.xlu1 %v483_v57 }
 0x206   :  { %v479_v59 = vpop.f32.mrf.mxu1 }
 0x207   :  { %v480_v60 = vadd.f32 %v479_v59, %v452_v58 }
 0x209   :  { %v486_v61 = vsel %vm482_vm8, %v480_v60, -inf }
 0x20a   :  { %487 = vmax.xlane.f32.xlu1 %v486_v61  ;;  %v923_v61 = vld [vmem:[%s1542_s16 + $0x18] sm:$0xff]  ;;  %s1233_s16 = smov [#allocation17]  }
 0x20b   :  { %774 = vmatpush.bf16.msrb.mxu0 %v923_v61  ;;  %s790_s23 = sshll.u32 %s1233_s16, 4  ;;  %s791_s23 = int_to_ptr.vmem [resolvable:$true] %s790_s23 }
 0x20f   :  { %775 = vmatpush.bf16.msrb.mxu0 %v922_v62 }
 0x213   :  { %776 = vmatpush.bf16.msrb.mxu0 %v921_v3 }
 0x217   :  { %777 = vmatpush.bf16.msrb.mxu0 %v920_v4 }
 0x275   :  { %v485_v5 = vpop.xlane.xlu1 %484 }
 0x276   :  { %v489_v6 = vsub.f32 %v478_v56, %v485_v5 }
 0x278   :  { %v491_v7 = vmul.f32 1.442695, %v489_v6 }
 0x27a   :  { %947 = vpow2.f32 %v491_v7 }
 0x27d   :  { %v488_v8 = vpop.xlane.xlu1 %487 }
 0x27e   :  { %v490_v9 = vsub.f32 %v480_v60, %v488_v8 }
 0x280   :  { %v948_v10 = vpop.eup %947  ;;  %v493_v11 = vmul.f32 1.442695, %v490_v9 }
 0x281   :  { %855 = vmatmul.msk.f32.vlgmr.msrb.gmra.mxu2 %vm482_vm8, %v948_v10 }
 0x282   :  { %949 = vpow2.f32 %v493_v11 }
 0x288   :  { %v950_v12 = vpop.eup %949 }
 0x289   :  { %856 = vmatmul.msk.f32.gmra.mxu2 %vm482_vm8, %v950_v12 }
 0x304   :  { %v526_v14 = vpop.f32.mrf.mxu2 }
 0x305   :  { %951 = vrcp.f32 %v526_v14 }
 0x30b   :  { %v952_v17 = vpop.eup %951 }
 0x30c   :  { %v529_v15 = vpop.f32.mrf.mxu2  ;;  %v534_v19 = vmul.f32 %v952_v17, %v948_v10 }
 0x30d   :  { %953 = vrcp.f32 %v529_v15 }
 0x313   :  { %v954_v18 = vpop.eup %953 }
 0x314   :  { %v535_v20 = vmul.f32 %v954_v18, %v950_v12 }
 0x316   :  { %v536_v21 = vpack.c.bf16 %v535_v20, %v534_v19 }
 0x318   :  { %857 = vmatmul.msk.bf16.vlgmr.msrb.gmra.mxu3 %vm482_vm8, %v536_v21 }
 0x39b   :  { %v549_v23 = vpop.f32.mrf.mxu3 }
 0x3a3   :  { %v551_v24 = vpop.f32.mrf.mxu3 }
 0x3a4   :  { %v554_v25 = vpack.c.bf16 %v551_v24, %v549_v23 }
 0x3a6   :  { %866 = vmatmul.msk.bf16.vlgmr.msra.gmra.mxu0 %vm202_vm0, %v554_v25 }
 0x423   :  { %v583_v26 = vpop.f32.mrf.mxu0 }
 0x424   :  { %v1483_v27 = vadd.f32 %v583_v26, %v1381_v0 }
 0x426   :  { %v588_v28 = vmul.f32 %v1483_v27, %v1483_v27 }
 0x428   :  { %v590_v29 = vsel %vm202_vm0, %v588_v28, 0.0 }
 0x429   :  { %591 = vadd.xlane.f32.xlu2 %v590_v29 }
 0x42b   :  { %v585_v30 = vpop.f32.mrf.mxu0 }
 0x42c   :  { %v1489_v31 = vadd.f32 %v585_v30, %v1388_v2 }
 0x42e   :  { %v589_v32 = vmul.f32 %v1489_v31, %v1489_v31 }
 0x430   :  { %v593_v33 = vsel %vm202_vm0, %v589_v32, 0.0 }
 0x431   :  { %594 = vadd.xlane.f32.xlu2 %v593_v33 }
 0x49c   :  { %v592_v0 = vpop.xlane.xlu2 %591 }
 0x49d   :  { %v596_v38 = vmul.f32 %v592_v0, %v1394_v16 }
 0x49f   :  { %v598_v39 = vadd.f32 1e-06, %v596_v38 }
 0x4a1   :  { %955 = vrsqrt.f32 %v598_v39  ;;  %vm606_vm10 = vweird.f32 %v598_v39 }
 0x4a4   :  { %v595_v2 = vpop.xlane.xlu2 %594 }
 0x4a5   :  { %v597_v40 = vmul.f32 %v595_v2, %v1394_v16  ;;  %v940_v16 = vld [vmem:[%s1528_s2] ss:$0 sm:$0xff] }
 0x4a7   :  { %v956_v41 = vpop.eup %955  ;;  %v599_v42 = vadd.f32 1e-06, %v597_v40 }
 0x4a8   :  { %v601_v43 = vmul.f32 %v956_v41, %v598_v39  ;;  %vm607_vm9 = vweird.f32 %v956_v41 }
 0x4a9   :  { %957 = vrsqrt.f32 %v599_v42  ;;  %vm608_vm11 = vmor %vm606_vm10, %vm607_vm9  ;;  %vm616_vm13 = vweird.f32 %v599_v42 }
 0x4aa   :  { %v602_v44 = vmul.f32 %v956_v41, %v601_v43 }
 0x4ac   :  { %v603_v45 = vmul.f32 0.5, %v602_v44 }
 0x4ae   :  { %v604_v46 = vsub.f32 1.5, %v603_v45 }
 0x4af   :  { %v958_v47 = vpop.eup %957 }
 0x4b0   :  { %v611_v48 = vmul.f32 %v958_v47, %v599_v42  ;;  %v605_v50 = vmul.f32 %v956_v41, %v604_v46  ;;  %vm617_vm12 = vweird.f32 %v958_v47 }
 0x4b1   :  { %vm618_vm14 = vmor %vm616_vm13, %vm617_vm12 }
 0x4b2   :  { %v612_v51 = vmul.f32 %v958_v47, %v611_v48  ;;  %v609_v52 = vsel %vm608_vm11, %v956_v41, %v605_v50 }
 0x4b3   :  { %v620_v54 = vmul.f32 %v609_v52, %v1483_v27 }
 0x4b4   :  { %v613_v55 = vmul.f32 0.5, %v612_v51 }
 0x4b5   :  { %v626_v58 = vmul.f32 %v940_v16, %v620_v54 }
 0x4b6   :  { %v614_v49 = vsub.f32 1.5, %v613_v55 }
 0x4b8   :  { %v615_v53 = vmul.f32 %v958_v47, %v614_v49 }
 0x4ba   :  { %v619_v56 = vsel %vm618_vm14, %v958_v47, %v615_v53 }
 0x4bb   :  { %v621_v57 = vmul.f32 %v619_v56, %v1489_v31 }
 0x4bd   :  { %v627_v59 = vmul.f32 %v940_v16, %v621_v57 }
 0x4bf   :  { %v628_v60 = vpack.c.bf16 %v627_v59, %v626_v58 }
 0x4c1   :  { %875 = vmatmul.msk.bf16.vlgmr.msra.gmra.mxu2 %vm202_vm0, %v628_v60  ;;  %884 = vmatmul.msk.bf16.vlgmr.msra.gmra.mxu3 %vm202_vm0, %v628_v60 }
 0x544   :  { %v657_v63 = vpop.f32.mrf.mxu2  ;;  %v687_v21 = vpop.f32.mrf.mxu3 }
 0x545   :  { %v885_v1 = vmul.f32 -1.442695, %v657_v63 }
 0x547   :  { %959 = vpow2.f32 %v885_v1 }
 0x54c   :  { %v659_v5 = vpop.f32.mrf.mxu2  ;;  %v689_v36 = vpop.f32.mrf.mxu3 }
 0x54d   :  { %v960_v6 = vpop.eup %959  ;;  %v886_v7 = vmul.f32 -1.442695, %v659_v5 }
 0x54e   :  { %v698_v8 = vadd.f32 1.0, %v960_v6 }
 0x54f   :  { %961 = vpow2.f32 %v886_v7 }
 0x550   :  { %963 = vrcp.f32 %v698_v8  ;;  %v711_v18 = vand.u32 2147483648, %v698_v8  ;;  %vm705_vm1 = vweird.f32 %v698_v8  ;;  %v709_v19 = vand.u32 2147483647, %v698_v8 }
 0x552   :  { %v712_v24 = vor.u32 1.1754944e-38, %v711_v18  ;;  %vm710_vm3 = vcmp.eq.f32.partialorder %v709_v19, 8.507059e+37 }
 0x555   :  { %v962_v9 = vpop.eup %961 }
 0x556   :  { %v964_v10 = vpop.eup %963  ;;  %v699_v11 = vadd.f32 1.0, %v962_v9 }
 0x557   :  { %v701_v12 = vmul.f32 %v964_v10, %v698_v8  ;;  %vm706_vm15 = vweird.f32 %v964_v10 }
 0x558   :  { %965 = vrcp.f32 %v699_v11  ;;  %vm707_vm2 = vmor %vm705_vm1, %vm706_vm15  ;;  %v726_v25 = vand.u32 2147483648, %v699_v11  ;;  %v724_v28 = vand.u32 2147483647, %v699_v11  ;;  %vm720_vm5 = vweird.f32 %v699_v11 }
 0x559   :  { %v702_v13 = vsub.f32 1.0, %v701_v12 }
 0x55a   :  { %v727_v32 = vor.u32 1.1754944e-38, %v726_v25  ;;  %vm725_vm7 = vcmp.eq.f32.partialorder %v724_v28, 8.507059e+37 }
 0x55b   :  { %v703_v14 = vmul.f32 %v964_v10, %v702_v13 }
 0x55d   :  { %v704_v15 = vadd.f32 %v964_v10, %v703_v14 }
 0x55e   :  { %v966_v17 = vpop.eup %965 }
 0x55f   :  { %v716_v20 = vmul.f32 %v966_v17, %v699_v11  ;;  %v708_v22 = vsel %vm707_vm2, %v964_v10, %v704_v15  ;;  %vm721_vm4 = vweird.f32 %v966_v17 }
 0x560   :  { %v713_v29 = vsel %vm710_vm3, %v712_v24, %v708_v22  ;;  %vm722_vm6 = vmor %vm720_vm5, %vm721_vm4 }
 0x561   :  { %v717_v23 = vsub.f32 1.0, %v716_v20  ;;  %v730_v33 = vmul.f32 %v713_v29, %v657_v63 }
 0x563   :  { %v718_v26 = vmul.f32 %v966_v17, %v717_v23  ;;  %v732_v37 = vmul.f32 %v730_v33, %v687_v21 }
 0x565   :  { %v719_v30 = vadd.f32 %v966_v17, %v718_v26 }
 0x567   :  { %v723_v34 = vsel %vm722_vm6, %v966_v17, %v719_v30 }
 0x568   :  { %v728_v35 = vsel %vm725_vm7, %v727_v32, %v723_v34 }
 0x569   :  { %v731_v0 = vmul.f32 %v728_v35, %v659_v5 }
 0x56b   :  { %v733_v38 = vmul.f32 %v731_v0, %v689_v36 }
 0x56d   :  { %v734_v39 = vpack.c.bf16 %v733_v38, %v732_v37 }
 0x56f   :  { %903 = vmatmul.msk.bf16.vlgmr.msrb.gmra.mxu0 %vm482_vm8, %v734_v39 }
 0x5ec   :  { %v779_v2 = vpop.f32.mrf.mxu0 }
 0x5ed   :  { %v780_v40 = vadd.f32 %v779_v2, %v1483_v27 }
 0x5ef   :  { %784 = vst.msk [vmem:[#allocation17] sm:$0xff] %vm202_vm0, %v780_v40 }
 0x5f4   :  { %v781_v41 = vpop.f32.mrf.mxu0 }
 0x5f5   :  { %v782_v42 = vadd.f32 %v781_v41, %v1489_v31 }
 0x5f7   :  { %785 = vst.msk [vmem:[#allocation17 + $0x8] sm:$0xff] %vm202_vm0, %v782_v42 }
 0x5f8   :  { %798 = dma.vmem_to_hbm [thread:$0]  %s791_s23, 256, %s793_s24, [#allocation4], %s1226_s8, %s1226_s8, %s1227_s22  }
 0x5f9   :  { %1217 = dma.done.wait [#allocation4], 256  }
 0x5fa   :  { %1218 = vsyncadd [#allocation4], 4294967040 }
 0x5fb   :  { %803 = vsyncpa [#allocation3], 1 }
 0x5fc   :  { %804 = vsyncpa [#allocation6], 1 }
 0x5fd   :  { %805 = vsyncpa [#allocation9], 1 }
 0x5fe   :  { %806 = vsyncpa [#allocation12], 1 }
 0x5ff   :  { %807 = vsyncpa [#allocation15], 1 }
 0x600   :  { %808 = vsyncpa [#allocation4], 1 }

</bundles_post_ra>
